<compile_context>
chip_gen: v5e
topology: v5e:2x2
jax: 0.10.0
libtpu: 0.0.40
codegen_flags: <defaults>
</compile_context>

<pallas_src>
import functools
import math

import jax
import jax.numpy as jnp
from jax.experimental import pallas as pl
from jax.experimental.pallas import tpu as pltpu

ALPHA = 0.75
GAMMA = 2.0


def _vfl_kernel(pred_ref, gt_ref, out_ref, *, alpha, gamma):
    # All math in float32 (matches torch autocast(enabled=False) + .float()).
    pred = pred_ref[...].astype(jnp.float32)
    gt = gt_ref[...].astype(jnp.float32)

    # One EUP exp shared by the sigmoid and the BCE log-tail.
    e = jnp.exp(-jnp.abs(pred))          # exp(-|x|) in (0, 1]
    one_plus_e = 1.0 + e
    r = pl.reciprocal(one_plus_e, approx=True)
    r = r * (2.0 - one_plus_e * r)       # one Newton step (VALU only) -> ~f32 accurate
    # sigmoid(x) = 1/(1+e) for x>=0,  e/(1+e) for x<0
    sig = jnp.where(pred >= 0.0, 1.0, e) * r

    d = sig - gt
    # |d|^gamma — fast path for the default gamma=2.0 (one VPU mul, no EUP).
    if gamma == 2.0:
        pw = d * d
    elif float(gamma).is_integer() and gamma > 0:
        pw = jnp.abs(d) ** int(gamma)        # integer power -> repeated muls
    else:
        pw = jnp.power(jnp.abs(d), gamma)    # generic (EUP exp/log) path

    # weight = alpha*|d|^gamma on gt<=0, gt on gt>0 (single fused select).
    weight = jnp.where(gt > 0.0, gt, alpha * pw)

    # Numerically-stable BCE-with-logits: max(x,0) - x*y + log1p(exp(-|x|)).
    bce = jnp.maximum(pred, 0.0) - pred * gt + jnp.log1p(e)

    out_ref[...] = bce * weight


def _pick_lane_width(n, max_w=2048):
    """Largest multiple of 128 (<= max_w) that exactly divides n; 0 if none."""
    if n < 128:
        return 0
    w = min(max_w, (n // 128) * 128)
    while w >= 128:
        if n % w == 0:
            return w
        w -= 128
    return 0


def varifocal_loss(pred_score, gt_score, *, alpha=ALPHA, gamma=GAMMA,
                   block_bytes=2 * 1024 * 1024, max_lane_width=2048):
    """Elementwise varifocal loss. Any (identical) shape, any float dtype.

    bf16 inputs are streamed as bf16 and cast to f32 inside the kernel.
    Returns float32 with the same shape.
    """
    assert pred_score.shape == gt_score.shape
    orig_shape = pred_score.shape
    n = math.prod(orig_shape)

    pred_flat = pred_score.reshape(-1)
    gt_flat = gt_score.reshape(-1)

    # Common path: a lane-dense W that divides n exactly -> no pad, no trim.
    W = _pick_lane_width(n, max_lane_width)
    trim = False
    if W == 0:
        # Rare fallback (n not a multiple of 128): pad <= W-1 elements, trim after.
        W = 512 if n >= 512 else 128
        n_total = pl.cdiv(n, W) * W
        pad = n_total - n
        pred_flat = jnp.pad(pred_flat, (0, pad))
        gt_flat = jnp.pad(gt_flat, (0, pad))
        trim = True
    else:
        n_total = n

    rows = n_total // W
    pred2d = pred_flat.reshape(rows, W)     # contiguous reshape: no data movement
    gt2d = gt_flat.reshape(rows, W)

    # Row tile: ~block_bytes per f32 output block, multiple of 8, and split into
    # at least 2 grid steps when possible so both v7x TensorCores get work.
    if rows <= 8:
        rt = rows                           # full-extent rows dim (always legal)
    else:
        rt = max(8, (block_bytes // (4 * W)) // 8 * 8)
        half_rows = (((rows + 1) // 2) + 7) // 8 * 8
        rt = min(rt, half_rows)
    grid = (pl.cdiv(rows, rt),)             # ragged last block handled by Pallas masking

    in_bytes = (pred2d.size * pred2d.dtype.itemsize
                + gt2d.size * gt2d.dtype.itemsize)
    out_bytes = rows * W * 4
    cost = pl.CostEstimate(
        flops=14 * n_total,
        transcendentals=3 * n_total,
        bytes_accessed=in_bytes + out_bytes,
    )

    kernel = functools.partial(_vfl_kernel, alpha=alpha, gamma=gamma)

    out2d = pl.pallas_call(
        kernel,
        out_shape=jax.ShapeDtypeStruct((rows, W), jnp.float32),
        grid_spec=pltpu.PrefetchScalarGridSpec(
            num_scalar_prefetch=0,
            grid=grid,
            in_specs=[
                pl.BlockSpec((rt, W), lambda i: (i, 0)),
                pl.BlockSpec((rt, W), lambda i: (i, 0)),
            ],
            out_specs=pl.BlockSpec((rt, W), lambda i: (i, 0)),
        ),
        compiler_params=pltpu.CompilerParams(
            dimension_semantics=("parallel",),      # shards rows across TCs on v7x
            vmem_limit_bytes=32 * 1024 * 1024,      # headroom on v5e, safe on v7x
        ),
        cost_estimate=cost,
    )(pred2d, gt2d)

    out_flat = out2d.reshape(-1)
    if trim:
        out_flat = out_flat[:n]
    return out_flat.reshape(orig_shape)


def _reference(pred_score, gt_score, alpha=ALPHA, gamma=GAMMA):
    pred = pred_score.astype(jnp.float32)
    gt = gt_score.astype(jnp.float32)
    weight = (
        alpha * jnp.abs(jax.nn.sigmoid(pred) - gt) ** gamma
        * (gt <= 0.0).astype(jnp.float32)
        + gt * (gt > 0.0).astype(jnp.float32)
    )
    bce = jnp.maximum(pred, 0.0) - pred * gt + jnp.log1p(jnp.exp(-jnp.abs(pred)))
    return bce * weight


if __name__ == "__main__":
    key = jax.random.PRNGKey(0)
    k1, k2, k3 = jax.random.split(key, 3)

    # Small YOLO-like head: C = 80 (not a multiple of 128) -> zero-copy path.
    B, A, C = 2, 8, 80
    pred_score = jax.random.normal(k1, (B, A, C), dtype=jnp.float32) * 2.0
    gt_vals = jax.random.uniform(k2, (B, A, C), dtype=jnp.float32)
    gt_mask = jax.random.bernoulli(k3, 0.2, (B, A, C))
    gt_score = jnp.where(gt_mask, gt_vals, 0.0)

    out = jax.block_until_ready(varifocal_loss(pred_score, gt_score))
    ref = _reference(pred_score, gt_score)
    assert out.shape == (B, A, C)
    assert out.dtype == jnp.float32
    # Tolerance accounts for the approx-reciprocal (+Newton) sigmoid path.
    assert jnp.allclose(out, ref, atol=1e-4, rtol=1e-4), "f32 mismatch vs reference"

    # bf16 inputs (autocast producer) stream as bf16, compute/output f32.
    out_bf16 = jax.block_until_ready(
        varifocal_loss(pred_score.astype(jnp.bfloat16), gt_score.astype(jnp.bfloat16)))
    ref_bf16 = _reference(pred_score.astype(jnp.bfloat16), gt_score.astype(jnp.bfloat16))
    assert out_bf16.dtype == jnp.float32
    assert jnp.allclose(out_bf16, ref_bf16, atol=1e-4, rtol=1e-4), "bf16 mismatch"

    # Multi-step grid with a ragged edge row-block (rows % rt != 0).
    p2 = jax.random.normal(k1, (2, 336, 80), dtype=jnp.float32)
    g2 = jnp.where(jax.random.bernoulli(k3, 0.2, (2, 336, 80)),
                   jax.random.uniform(k2, (2, 336, 80), dtype=jnp.float32), 0.0)
    out2 = jax.block_until_ready(varifocal_loss(p2, g2))
    assert jnp.allclose(out2, _reference(p2, g2), atol=1e-4, rtol=1e-4), "edge-block mismatch"

    # Fallback path: n not a multiple of 128 (small pad + trim).
    p3 = jax.random.normal(k2, (3, 7, 5), dtype=jnp.float32)
    g3 = (jnp.abs(jax.random.normal(k3, (3, 7, 5), dtype=jnp.float32))
          * jax.random.bernoulli(k1, 0.3, (3, 7, 5)).astype(jnp.float32))
    out3 = jax.block_until_ready(varifocal_loss(p3, g3))
    assert out3.shape == (3, 7, 5)
    assert jnp.allclose(out3, _reference(p3, g3), atol=1e-4, rtol=1e-4), "fallback mismatch"

    print("KERNEL_OK")
</pallas_src>

<mosaic_0001>
module attributes {stable_mosaic.version = 11 : i64} {
  func.func @_vfl_kernel(%arg0: i32, %arg1: memref<1x1280xf32, #tpu.memory_space<vmem>>, %arg2: memref<1x1280xf32, #tpu.memory_space<vmem>>, %arg3: memref<1x1280xf32, #tpu.memory_space<vmem>>) attributes {dimension_semantics = [#tpu.dimension_semantics<parallel>], iteration_bounds = array<i64: 1>, scalar_prefetch = 0 : i64, scratch_operands = 0 : i64, tpu.core_type = #tpu.core_type<tc>, window_params = [{transform_indices = @transform_0, window_bounds = array<i64: 1, 1280>}, {transform_indices = @transform_1, window_bounds = array<i64: 1, 1280>}, {transform_indices = @transform_2, window_bounds = array<i64: 1, 1280>}]} {
    %c0 = arith.constant 0 : index
    %c0_0 = arith.constant 0 : index
    %0 = vector.load %arg1[%c0, %c0_0] : memref<1x1280xf32, #tpu.memory_space<vmem>>, vector<1x1280xf32>
    %c0_1 = arith.constant 0 : index
    %c0_2 = arith.constant 0 : index
    %1 = vector.load %arg2[%c0_1, %c0_2] : memref<1x1280xf32, #tpu.memory_space<vmem>>, vector<1x1280xf32>
    %2 = math.absf %0 : vector<1x1280xf32>
    %cst = arith.constant 0.000000e+00 : f32
    %3 = vector.broadcast %cst : f32 to vector<1x1280xf32>
    %4 = arith.subf %3, %2 : vector<1x1280xf32>
    %5 = math.exp %4 : vector<1x1280xf32>
    %cst_3 = arith.constant 1.000000e+00 : f32
    %6 = vector.broadcast %cst_3 : f32 to vector<1x1280xf32>
    %7 = arith.addf %6, %5 : vector<1x1280xf32>
    %8 = tpu.reciprocal %7 {approx = true} : vector<1x1280xf32> -> vector<1x1280xf32>
    %9 = arith.mulf %7, %8 : vector<1x1280xf32>
    %cst_4 = arith.constant 2.000000e+00 : f32
    %10 = vector.broadcast %cst_4 : f32 to vector<1x1280xf32>
    %11 = arith.subf %10, %9 : vector<1x1280xf32>
    %12 = arith.mulf %8, %11 : vector<1x1280xf32>
    %cst_5 = arith.constant 0.000000e+00 : f32
    %13 = vector.broadcast %cst_5 : f32 to vector<1x1280xf32>
    %14 = arith.cmpf oge, %0, %13 : vector<1x1280xf32>
    %cst_6 = arith.constant 1.000000e+00 : f32
    %15 = vector.broadcast %cst_6 : f32 to vector<1x1280xf32>
    %16 = arith.select %14, %15, %5 : vector<1x1280xi1>, vector<1x1280xf32>
    %17 = arith.mulf %16, %12 : vector<1x1280xf32>
    %18 = arith.subf %17, %1 : vector<1x1280xf32>
    %19 = arith.mulf %18, %18 : vector<1x1280xf32>
    %cst_7 = arith.constant 0.000000e+00 : f32
    %20 = vector.broadcast %cst_7 : f32 to vector<1x1280xf32>
    %21 = arith.cmpf ogt, %1, %20 : vector<1x1280xf32>
    %cst_8 = arith.constant 7.500000e-01 : f32
    %22 = vector.broadcast %cst_8 : f32 to vector<1x1280xf32>
    %23 = arith.mulf %22, %19 : vector<1x1280xf32>
    %24 = arith.select %21, %1, %23 : vector<1x1280xi1>, vector<1x1280xf32>
    %cst_9 = arith.constant 0.000000e+00 : f32
    %25 = vector.broadcast %cst_9 : f32 to vector<1x1280xf32>
    %26 = arith.maximumf %0, %25 : vector<1x1280xf32>
    %27 = arith.mulf %0, %1 : vector<1x1280xf32>
    %28 = arith.subf %26, %27 : vector<1x1280xf32>
    %29 = math.log1p %5 : vector<1x1280xf32>
    %30 = arith.addf %28, %29 : vector<1x1280xf32>
    %31 = arith.mulf %30, %24 : vector<1x1280xf32>
    %c0_10 = arith.constant 0 : index
    %c0_11 = arith.constant 0 : index
    %32 = vector.load %arg3[%c0_10, %c0_11] : memref<1x1280xf32, #tpu.memory_space<vmem>>, vector<1x1280xf32>
    tpu.vector_store %arg3[%c0_10, %c0_11], %31 {strides = array<i32>} : memref<1x1280xf32, #tpu.memory_space<vmem>>, vector<1x1280xf32>,
    return
  }
  func.func @transform_0(%arg0: i32) -> (i32, i32) {
    %c0_i32 = arith.constant 0 : i32
    %c0_i32_0 = arith.constant 0 : i32
    return %arg0, %c0_i32 : i32, i32
  }
  func.func @transform_1(%arg0: i32) -> (i32, i32) {
    %c0_i32 = arith.constant 0 : i32
    %c0_i32_0 = arith.constant 0 : i32
    return %arg0, %c0_i32 : i32, i32
  }
  func.func @transform_2(%arg0: i32) -> (i32, i32) {
    %c0_i32 = arith.constant 0 : i32
    %c0_i32_0 = arith.constant 0 : i32
    return %arg0, %c0_i32 : i32, i32
  }
}

</mosaic_0001>

<bundles_post_ra>
// kernel: tpu_custom_call.1
= control target key start
LH: loop header
LB: loop body
LE: loop exit
PB: predicated region body
PF: predicated region fallthrough
CT: control target
= control target key end

     0   :  { %7 = vsyncpa [#allocation3], 0  ;;  %s256_s0 = inlined_call_operand.hbm [shape: f32[1,1280], index: 0, kind: input, shape index: {}]   ;;  %s257_s1 = inlined_call_operand.hbm [shape: f32[1,1280], index: 1, kind: input, shape index: {}]   ;;  %s258_s2 = inlined_call_operand.hbm [shape: f32[1,1280], index: 2, kind: output, shape index: {}]  }
   0x1   :  { %8 = vsyncpa [#allocation6], 0 }
   0x2   :  { %9 = vsyncpa [#allocation4], 0  ;;  %s15_s11 = sshll.u32 %s256_s0, 4  ;;  %s223_s12 = smov [#allocation2]   ;;  %s16_s11 = int_to_ptr.hbm [resolvable:$true] %s15_s11 }
   0x3   :  { %s17_s13 = sshll.u32 %s223_s12, 4  ;;  %s26_s16 = sshll.u32 %s257_s1, 4  ;;  %s18_s13 = int_to_ptr.vmem [resolvable:$true] %s17_s13  ;;  %s27_s16 = int_to_ptr.hbm [resolvable:$true] %s26_s16 }
   0x4   :  { %20 = dma.hbm_to_vmem [thread:$0]  %s16_s11, 160, %s18_s13, [#allocation3]  }
   0x5   :  { %s224_s17 = smov [#allocation5]  }
   0x6   :  { %s28_s18 = sshll.u32 %s224_s17, 4  ;;  %s29_s18 = int_to_ptr.vmem [resolvable:$true] %s28_s18 }
   0x7   :  { %31 = dma.hbm_to_vmem [thread:$0]  %s27_s16, 160, %s29_s18, [#allocation6]  }
   0x8   :  { %217 = dma.done.wait [#allocation3], 160  }
   0x9   :  { %218 = vsyncadd [#allocation3], 4294967136 }
   0xa   :  { %219 = dma.done.wait [#allocation6], 160  }
   0xb   :  { %220 = vsyncadd [#allocation6], 4294967136  ;;  %v40_v0 = vld [vmem:[#allocation2] sm:$0xff]  ;;  %v41_v1 = vld [vmem:[#allocation2 + $0x8] sm:$0x3]  ;;  %v107_v53 = vlaneseq  ;;  %s225_s0 = smov [#allocation7]  }
   0xc   :  { %v44_v2 = vand.u32 2147483647, %v40_v0  ;;  %v45_v3 = vand.u32 2147483647, %v41_v1  ;;  %v42_v16 = vld [vmem:[#allocation5] sm:$0xff]  ;;  %vm62_vm0 = vcmp.ge.f32.partialorder %v40_v0, 0.0 }
   0xd   :  { %v43_v22 = vld [vmem:[#allocation5 + $0x8] sm:$0x3]  ;;  %vm63_vm1 = vcmp.ge.f32.partialorder %v41_v1, 0.0  ;;  %v78_v27 = vmax.f32 %v40_v0, 0.0  ;;  %v80_v28 = vmul.f32 %v42_v16, %v40_v0  ;;  %v79_v36 = vmax.f32 %v41_v1, 0.0  ;;  %s117_s1 = sshll.u32 %s225_s0, 4  ;;  %s118_s1 = int_to_ptr.vmem [resolvable:$true] %s117_s1 }
   0xe   :  { %v46_v4 = vsub.f32 0.0, %v44_v2  ;;  %v47_v5 = vsub.f32 0.0, %v45_v3  ;;  %v81_v37 = vmul.f32 %v43_v22, %v41_v1  ;;  %vm72_vm4 = vcmp.gt.f32.partialorder %v42_v16, 0.0  ;;  %s119_s21 = sshll.u32 %s258_s2, 4  ;;  %s120_s21 = int_to_ptr.hbm [resolvable:$true] %s119_s21 }
   0xf   :  { %v82_v42 = vsub.f32 %v78_v27, %v80_v28  ;;  %vm73_vm5 = vcmp.gt.f32.partialorder %v43_v22, 0.0  ;;  %vm109_vm6 = vcmp.lt.s32.totalorder %v107_v53, 256 }
  0x10   :  { %v48_v6 = vmul.f32 1.442695, %v46_v4  ;;  %v50_v7 = vmul.f32 1.442695, %v47_v5  ;;  %v83_v46 = vsub.f32 %v79_v36, %v81_v37 }
  0x12   :  { %133 = vpow2.f32 %v48_v6 }
  0x13   :  { %135 = vpow2.f32 %v50_v7 }
  0x18   :  { %v134_v8 = vpop.eup %133 }
  0x19   :  { %v136_v9 = vpop.eup %135  ;;  %v52_v10 = vadd.f32 1.0, %v134_v8  ;;  %v87_v12 = vmul.f32 -0.5, %v134_v8  ;;  %v90_v20 = vand.u32 2147483647, %v134_v8  ;;  %v64_v26 = vsel %vm62_vm0, 1.0, %v134_v8 }
  0x1a   :  { %v53_v11 = vadd.f32 1.0, %v136_v9  ;;  %v96_v13 = vmul.f32 -0.5, %v136_v9  ;;  %v99_v29 = vand.u32 2147483647, %v136_v9  ;;  %v65_v35 = vsel %vm63_vm1, 1.0, %v136_v9 }
  0x1b   :  { %137 = vrcp.f32 %v52_v10  ;;  %v88_v18 = vadd.f32 1.0, %v87_v12  ;;  %vm247_vm2 = vcmp.lt.f32.partialorder %v90_v20, 0.0004427343 }
  0x1c   :  { %139 = vlog2.f32 %v52_v10  ;;  %v97_v24 = vadd.f32 1.0, %v96_v13  ;;  %vm100_vm3 = vcmp.lt.f32.partialorder %v99_v29, 0.0004427343 }
  0x1d   :  { %141 = vrcp.f32 %v53_v11  ;;  %v89_v32 = vmul.f32 %v134_v8, %v88_v18 }
  0x1e   :  { %143 = vlog2.f32 %v53_v11  ;;  %v98_v41 = vmul.f32 %v136_v9, %v97_v24 }
  0x21   :  { %v138_v14 = vpop.eup %137 }
  0x22   :  { %v140_v15 = vpop.eup %139  ;;  %v56_v17 = vmul.f32 %v138_v14, %v52_v10 }
  0x23   :  { %v142_v19 = vpop.eup %141  ;;  %v86_v31 = vmul.f32 0.6931472, %v140_v15 }
  0x24   :  { %v58_v21 = vsub.f32 2.0, %v56_v17  ;;  %v57_v23 = vmul.f32 %v142_v19, %v53_v11  ;;  %v144_v25 = vpop.eup %143 }
  0x25   :  { %v95_v40 = vmul.f32 0.6931472, %v144_v25  ;;  %v92_v44 = vsel %vm247_vm2, %v89_v32, %v86_v31 }
  0x26   :  { %v60_v30 = vmul.f32 %v138_v14, %v58_v21  ;;  %v59_v33 = vsub.f32 2.0, %v57_v23  ;;  %v102_v50 = vadd.f32 %v92_v44, %v82_v42 }
  0x27   :  { %v101_v49 = vsel %vm100_vm3, %v98_v41, %v95_v40 }
  0x28   :  { %v66_v38 = vmul.f32 %v64_v26, %v60_v30  ;;  %v61_v39 = vmul.f32 %v142_v19, %v59_v33  ;;  %v103_v54 = vadd.f32 %v101_v49, %v83_v46 }
  0x2a   :  { %v68_v43 = vsub.f32 %v66_v38, %v42_v16  ;;  %v67_v45 = vmul.f32 %v65_v35, %v61_v39 }
  0x2c   :  { %v70_v47 = vmul.f32 %v68_v43, %v68_v43  ;;  %v69_v48 = vsub.f32 %v67_v45, %v43_v22 }
  0x2e   :  { %v74_v51 = vmul.f32 0.75, %v70_v47  ;;  %v71_v52 = vmul.f32 %v69_v48, %v69_v48 }
  0x30   :  { %v76_v55 = vsel %vm72_vm4, %v42_v16, %v74_v51  ;;  %v75_v56 = vmul.f32 0.75, %v71_v52 }
  0x31   :  { %v104_v57 = vmul.f32 %v102_v50, %v76_v55 }
  0x32   :  { %v77_v58 = vsel %vm73_vm5, %v43_v22, %v75_v56 }
  0x33   :  { %106 = vst [vmem:[#allocation7] sm:$0xff] %v104_v57  ;;  %v105_v59 = vmul.f32 %v103_v54, %v77_v58 }
  0x35   :  { %111 = vst.msk [vmem:[#allocation7 + $0x8] sm:$0x3] %vm109_vm6, %v105_v59 }
  0x36   :  { %122 = dma.vmem_to_hbm [thread:$0]  %s118_s1, 160, %s120_s21, [#allocation4]  }
  0x37   :  { %221 = dma.done.wait [#allocation4], 160  }
  0x38   :  { %222 = vsyncadd [#allocation4], 4294967136 }
  0x39   :  { %127 = vsyncpa [#allocation3], 1 }
  0x3a   :  { %128 = vsyncpa [#allocation6], 1 }
  0x3b   :  { %129 = vsyncpa [#allocation4], 1 }

</bundles_post_ra>
